<compile_context>
chip_gen: v5e
topology: v5e:2x2
jax: 0.10.0
libtpu: 0.0.40
codegen_flags: <defaults>
</compile_context>

<pallas_src>
import jax
import jax.numpy as jnp
from jax.experimental import pallas as pl
from jax.experimental.pallas import tpu as pltpu

LN_EPS = 1e-12
_MAX_TILE_K = 512  # multiple of 128; d_in chunk streamed per grid step


def _round_up(x, m):
    return (x + m - 1) // m * m


def cls_prediction_kernel(x_ref, w1_ref, b1_ref, w2_ref, b2_ref, o_ref, acc_ref):
    k = pl.program_id(1)

    @pl.when(k == 0)
    def _():
        acc_ref[...] = jnp.zeros_like(acc_ref)

    # Linear 1 partial product: (tile_n, tile_k) @ (tile_k, hidden) with bf16
    # operands, f32 accumulation on the MXU.
    acc_ref[...] += jnp.dot(x_ref[...], w1_ref[...],
                            preferred_element_type=jnp.float32)

    @pl.when(k == pl.num_programs(1) - 1)
    def _():
        # Bias + ReLU (VPU), all f32.
        h = jnp.maximum(acc_ref[...] + b1_ref[...], 0.0)

        # BertLayerNorm (eps=1e-12) over the full (untiled) hidden dim.
        # Single pass: var = E[h^2] - mean^2 (2 XLU reductions, no serial
        # mean -> centered -> var chain).
        inv_h = 1.0 / h.shape[-1]
        s1 = jnp.sum(h, axis=-1, keepdims=True)
        s2 = jnp.sum(h * h, axis=-1, keepdims=True)
        mean = s1 * inv_h
        var = jnp.maximum(s2 * inv_h - mean * mean, 0.0)
        h_norm = (h - mean) * jax.lax.rsqrt(var + LN_EPS)

        # Linear 2 (output_size == 1) with gamma already folded into the weight
        # row: contract hidden of the (1, hidden) row against hidden of
        # (tile_n, hidden) -> lane-dense (1, tile_n) full-lane store.  Kept in
        # f32: this dot is ~1/d_in of the kernel's FLOPs, bf16 buys nothing.
        out_row = jax.lax.dot_general(
            w2_ref[...], h_norm,
            dimension_numbers=(((1,), (1,)), ((), ())),
            preferred_element_type=jnp.float32)
        o_ref[...] = (out_row + b2_ref[0]).astype(o_ref.dtype)


def cls_prediction(x, params, *, tile_n=256):
    """x: [N, D_in]; params dict from make_params. Returns [N, 1] float32."""
    w1 = params["w1"].astype(jnp.bfloat16)
    b1 = params["b1"].reshape(1, -1).astype(jnp.float32)
    gamma = params["gamma"].reshape(-1).astype(jnp.float32)
    beta = params["beta"].reshape(-1).astype(jnp.float32)
    w2 = params["w2"].astype(jnp.float32)
    b2 = params["b2"].reshape(-1).astype(jnp.float32)

    N, d_in = x.shape
    d_in_w, hidden = w1.shape
    assert d_in == d_in_w, "input feature mismatch"
    # TODO(synk): output_size > 1 would need a (tile_n, OUT) MXU output path;
    # the module's default (and only use here) is output_size == 1.
    assert w2.shape == (hidden, 1), "kernel specialized for output_size == 1"

    # Fold BertLayerNorm's affine into the second linear:
    #   (h*gamma + beta) @ w2 + b2 == h @ (gamma*w2) + (beta . w2 + b2)
    w2_row = (gamma * w2[:, 0]).reshape(1, hidden)            # (1, H) lane-dense
    b2_fold = (jnp.dot(beta, w2[:, 0]) + b2[0]).reshape(1)    # SMEM scalar

    x = x.astype(jnp.bfloat16)

    # Row tiling: multiples of 128 keep the (1, tile_n) output store full-lane.
    tile_n = max(128, min(int(tile_n), _round_up(N, 128)))
    tile_n = _round_up(tile_n, 128)
    n_pad = _round_up(N, tile_n)

    # K (d_in) tiling: stream x / w1 in <=512-wide (128-aligned) chunks so the
    # resident VMEM footprint stays bounded even for large d_in.
    if d_in <= _MAX_TILE_K:
        tile_k, k_pad = d_in, d_in
    else:
        tile_k = _MAX_TILE_K
        k_pad = _round_up(d_in, tile_k)

    if n_pad != N or k_pad != d_in:
        x = jnp.pad(x, ((0, n_pad - N), (0, k_pad - d_in)))
    if k_pad != d_in:
        w1 = jnp.pad(w1, ((0, k_pad - d_in), (0, 0)))

    num_tiles = n_pad // tile_n
    num_k = k_pad // tile_k

    # VMEM request: double-buffered streamed tiles + resident params + f32
    # accumulator / LN temporaries, clamped to the device's capacity with
    # headroom (v7x: 64 MiB physical).
    est = (2 * tile_n * tile_k * 2          # x tiles (bf16, 2 bufs)
           + 2 * tile_k * hidden * 2        # w1 tiles (bf16, 2 bufs)
           + 2 * 2 * hidden * 4             # b1 + (gamma*w2) row (f32, 2 bufs)
           + 2 * tile_n * 4                 # output tiles
           + tile_n * hidden * 4            # f32 accumulator scratch
           + 3 * tile_n * hidden * 4)       # f32 LN temporaries
    try:
        vmem_cap = int(pltpu.get_tpu_info().vmem_capacity_bytes)
    except Exception:
        vmem_cap = 64 * 2**20               # conservative: smallest generation
    vmem_limit = int(min(max(32 * 2**20, int(1.5 * est)), vmem_cap - 8 * 2**20))

    out_slab = pl.pallas_call(
        cls_prediction_kernel,
        out_shape=jax.ShapeDtypeStruct((num_tiles, 1, tile_n), jnp.float32),
        grid_spec=pltpu.PrefetchScalarGridSpec(
            num_scalar_prefetch=0,
            grid=(num_tiles, num_k),
            in_specs=[
                pl.BlockSpec((tile_n, tile_k), lambda i, k: (i, k)),   # x tile
                pl.BlockSpec((tile_k, hidden), lambda i, k: (k, 0)),   # w1 tile
                pl.BlockSpec((1, hidden), lambda i, k: (0, 0)),        # b1
                pl.BlockSpec((1, hidden), lambda i, k: (0, 0)),        # gamma*w2 row
                pl.BlockSpec(memory_space=pltpu.MemorySpace.SMEM),     # folded b2 scalar
            ],
            # Lane-dense output slab: one (1, tile_n) full-lane row per row tile.
            out_specs=pl.BlockSpec((None, 1, tile_n), lambda i, k: (i, 0, 0)),
            scratch_shapes=[pltpu.VMEM((tile_n, hidden), jnp.float32)],
        ),
        compiler_params=pltpu.CompilerParams(
            dimension_semantics=("parallel", "arbitrary"),
            vmem_limit_bytes=vmem_limit),
    )(x, w1, b1, w2_row, b2_fold)

    # (num_tiles, 1, tile_n) -> (n_pad, 1) -> (N, 1): pure layout plumbing.
    return out_slab.reshape(n_pad, 1)[:N]


def make_params(key, input_size, hidden_size, output_size=1):
    k1, k2, k3, k4, k5, k6 = jax.random.split(key, 6)
    # Deterministic synthetic init (shapes match nn.Linear / BertLayerNorm).
    # gamma / beta are non-trivial so the LN-affine folding is actually tested.
    w1 = jax.random.normal(k1, (input_size, hidden_size), jnp.float32) * 0.05
    b1 = jax.random.normal(k2, (1, hidden_size), jnp.float32) * 0.05
    gamma = 1.0 + 0.1 * jax.random.normal(k5, (1, hidden_size), jnp.float32)
    beta = 0.1 * jax.random.normal(k6, (1, hidden_size), jnp.float32)
    w2 = jax.random.normal(k3, (hidden_size, output_size), jnp.float32) * 0.05
    b2 = jax.random.normal(k4, (1, output_size), jnp.float32) * 0.05
    return dict(w1=w1, b1=b1, gamma=gamma, beta=beta, w2=w2, b2=b2)


def cls_prediction_ref(x, p):
    h = x @ p["w1"] + p["b1"]
    h = jnp.maximum(h, 0.0)
    mean = jnp.mean(h, axis=-1, keepdims=True)
    var = jnp.mean((h - mean) ** 2, axis=-1, keepdims=True)
    h = (h - mean) * jax.lax.rsqrt(var + LN_EPS)
    h = h * p["gamma"] + p["beta"]
    return h @ p["w2"] + p["b2"]


if __name__ == "__main__":
    # Small shapes consistent with the module's forward (tokens, hidden=32).
    batch, seq, hidden = 2, 8, 32
    input_size, output_size = hidden, 1

    key = jax.random.PRNGKey(0)
    kx, kp = jax.random.split(key)
    x = jax.random.normal(kx, (batch, seq, input_size), jnp.float32)
    params = make_params(kp, input_size, hidden, output_size)

    x_rows = x.reshape(batch * seq, input_size)      # flatten leading dims
    out_rows = cls_prediction(x_rows, params)
    jax.block_until_ready(out_rows)
    out = out_rows.reshape(batch, seq, output_size)

    ref = cls_prediction_ref(x_rows, params).reshape(batch, seq, output_size)
    assert jnp.allclose(out, ref, atol=2e-2, rtol=2e-2), "mismatch (small case)"

    # Also exercise the K-tiled (d_in > 512) multi-row-tile path.
    kx2, kp2 = jax.random.split(jax.random.PRNGKey(1))
    n2, d_in2, hidden2 = 200, 1280, 128
    x2 = jax.random.normal(kx2, (n2, d_in2), jnp.float32)
    params2 = make_params(kp2, d_in2, hidden2, 1)
    out2 = cls_prediction(x2, params2)
    jax.block_until_ready(out2)
    ref2 = cls_prediction_ref(x2, params2)
    assert jnp.allclose(out2, ref2, atol=5e-2, rtol=5e-2), "mismatch (k-tiled case)"

    print("KERNEL_OK")
</pallas_src>

<mosaic_0001>
module attributes {stable_mosaic.version = 11 : i64} {
  func.func @cls_prediction_kernel(%arg0: i32, %arg1: i32, %arg2: memref<128x32xbf16, #tpu.memory_space<vmem>>, %arg3: memref<32x32xbf16, #tpu.memory_space<vmem>>, %arg4: memref<1x32xf32, #tpu.memory_space<vmem>>, %arg5: memref<1x32xf32, #tpu.memory_space<vmem>>, %arg6: memref<1xf32, #tpu.memory_space<smem>>, %arg7: memref<1x1x128xf32, #tpu.memory_space<vmem>>, %arg8: memref<128x32xf32, #tpu.memory_space<vmem>>) attributes {dimension_semantics = [#tpu.dimension_semantics<parallel>, #tpu.dimension_semantics<arbitrary>], iteration_bounds = array<i64: 1, 1>, scalar_prefetch = 0 : i64, scratch_operands = 1 : i64, tpu.core_type = #tpu.core_type<tc>, window_params = [{transform_indices = @transform_0, window_bounds = array<i64: 128, 32>}, {transform_indices = @transform_1, window_bounds = array<i64: 32, 32>}, {pipeline_mode = #tpu.pipeline_mode<synchronous>, transform_indices = @transform_2, window_bounds = array<i64: 1, 32>}, {pipeline_mode = #tpu.pipeline_mode<synchronous>, transform_indices = @transform_3, window_bounds = array<i64: 1, 32>}, {transform_indices = @transform_4, window_bounds = array<i64: 1>}, {transform_indices = @transform_5, window_bounds = array<i64: 1, 1, 128>}]} {
    %c0_i32 = arith.constant 0 : i32
    %0 = arith.cmpi eq, %arg1, %c0_i32 : i32
    %1 = arith.extui %0 : i1 to i32
    %c0_i32_0 = arith.constant 0 : i32
    %2 = arith.cmpi ne, %1, %c0_i32_0 : i32
    scf.if %2 {
      %cst_10 = arith.constant 0.000000e+00 : f32
      %12 = vector.broadcast %cst_10 : f32 to vector<128x32xf32>
      %c0_11 = arith.constant 0 : index
      %c0_12 = arith.constant 0 : index
      %13 = vector.load %arg8[%c0_11, %c0_12] : memref<128x32xf32, #tpu.memory_space<vmem>>, vector<128x32xf32>
      tpu.vector_store %arg8[%c0_11, %c0_12], %12 {strides = array<i32>} : memref<128x32xf32, #tpu.memory_space<vmem>>, vector<128x32xf32>,
    } else {
    }
    %c0 = arith.constant 0 : index
    %c0_1 = arith.constant 0 : index
    %3 = vector.load %arg8[%c0, %c0_1] : memref<128x32xf32, #tpu.memory_space<vmem>>, vector<128x32xf32>
    %c0_2 = arith.constant 0 : index
    %c0_3 = arith.constant 0 : index
    %4 = vector.load %arg2[%c0_2, %c0_3] : memref<128x32xbf16, #tpu.memory_space<vmem>>, vector<128x32xbf16>
    %c0_4 = arith.constant 0 : index
    %c0_5 = arith.constant 0 : index
    %5 = vector.load %arg3[%c0_4, %c0_5] : memref<32x32xbf16, #tpu.memory_space<vmem>>, vector<32x32xbf16>
    %cst = arith.constant dense<0.000000e+00> : vector<128x32xf32>
    %6 = tpu.matmul %4, %5, %cst {dimension_numbers = #tpu.dot_dimension_numbers<[1], [0], [0], [1], [0, 0, 1, 1], [], []>} : vector<128x32xbf16>, vector<32x32xbf16>, vector<128x32xf32> -> vector<128x32xf32>
    %7 = arith.addf %3, %6 : vector<128x32xf32>
    %c0_6 = arith.constant 0 : index
    %c0_7 = arith.constant 0 : index
    %8 = vector.load %arg8[%c0_6, %c0_7] : memref<128x32xf32, #tpu.memory_space<vmem>>, vector<128x32xf32>
    tpu.vector_store %arg8[%c0_6, %c0_7], %7 {strides = array<i32>} : memref<128x32xf32, #tpu.memory_space<vmem>>, vector<128x32xf32>,
    %c0_i32_8 = arith.constant 0 : i32
    %9 = arith.cmpi eq, %arg1, %c0_i32_8 : i32
    %10 = arith.extui %9 : i1 to i32
    %c0_i32_9 = arith.constant 0 : i32
    %11 = arith.cmpi ne, %10, %c0_i32_9 : i32
    scf.if %11 {
      %c0_10 = arith.constant 0 : index
      %c0_11 = arith.constant 0 : index
      %12 = vector.load %arg8[%c0_10, %c0_11] : memref<128x32xf32, #tpu.memory_space<vmem>>, vector<128x32xf32>
      %c0_12 = arith.constant 0 : index
      %c0_13 = arith.constant 0 : index
      %13 = vector.load %arg4[%c0_12, %c0_13] : memref<1x32xf32, #tpu.memory_space<vmem>>, vector<1x32xf32>
      %14 = vector.broadcast %13 : vector<1x32xf32> to vector<128x32xf32>
      %15 = arith.addf %12, %14 : vector<128x32xf32>
      %cst_14 = arith.constant 0.000000e+00 : f32
      %16 = vector.broadcast %cst_14 : f32 to vector<128x32xf32>
      %17 = arith.maximumf %15, %16 : vector<128x32xf32>
      %cst_15 = arith.constant dense<0.000000e+00> : vector<128xf32>
      %18 = vector.multi_reduction <add>, %17, %cst_15 [1] : vector<128x32xf32> to vector<128xf32>
      %19 = vector.shape_cast %18 : vector<128xf32> to vector<128x1xf32>
      %20 = arith.mulf %17, %17 : vector<128x32xf32>
      %cst_16 = arith.constant dense<0.000000e+00> : vector<128xf32>
      %21 = vector.multi_reduction <add>, %20, %cst_16 [1] : vector<128x32xf32> to vector<128xf32>
      %22 = vector.shape_cast %21 : vector<128xf32> to vector<128x1xf32>
      %cst_17 = arith.constant 3.125000e-02 : f32
      %23 = vector.broadcast %cst_17 : f32 to vector<128x1xf32>
      %24 = arith.mulf %19, %23 : vector<128x1xf32>
      %cst_18 = arith.constant 3.125000e-02 : f32
      %25 = vector.broadcast %cst_18 : f32 to vector<128x1xf32>
      %26 = arith.mulf %22, %25 : vector<128x1xf32>
      %27 = arith.mulf %24, %24 : vector<128x1xf32>
      %28 = arith.subf %26, %27 : vector<128x1xf32>
      %cst_19 = arith.constant 0.000000e+00 : f32
      %29 = vector.broadcast %cst_19 : f32 to vector<128x1xf32>
      %30 = arith.maximumf %28, %29 : vector<128x1xf32>
      %31 = vector.broadcast %24 : vector<128x1xf32> to vector<128x32xf32>
      %32 = arith.subf %17, %31 : vector<128x32xf32>
      %cst_20 = arith.constant 9.99999996E-13 : f32
      %33 = vector.broadcast %cst_20 : f32 to vector<128x1xf32>
      %34 = arith.addf %30, %33 : vector<128x1xf32>
      %35 = math.rsqrt %34 : vector<128x1xf32>
      %36 = vector.broadcast %35 : vector<128x1xf32> to vector<128x32xf32>
      %37 = arith.mulf %32, %36 : vector<128x32xf32>
      %c0_21 = arith.constant 0 : index
      %c0_22 = arith.constant 0 : index
      %38 = vector.load %arg5[%c0_21, %c0_22] : memref<1x32xf32, #tpu.memory_space<vmem>>, vector<1x32xf32>
      %cst_23 = arith.constant dense<0.000000e+00> : vector<1x128xf32>
      %39 = tpu.matmul %38, %37, %cst_23 {dimension_numbers = #tpu.dot_dimension_numbers<[1], [1], [0], [0], [0, 0, 1, 0], [], []>} : vector<1x32xf32>, vector<128x32xf32>, vector<1x128xf32> -> vector<1x128xf32>
      %c0_24 = arith.constant 0 : index
      %40 = memref.load %arg6[%c0_24] : memref<1xf32, #tpu.memory_space<smem>>
      %41 = vector.broadcast %40 : f32 to vector<1x128xf32>
      %42 = arith.addf %39, %41 : vector<1x128xf32>
      %c0_25 = arith.constant 0 : index
      %c0_26 = arith.constant 0 : index
      %c0_27 = arith.constant 0 : index
      %43 = vector.load %arg7[%c0_25, %c0_26, %c0_27] : memref<1x1x128xf32, #tpu.memory_space<vmem>>, vector<1x1x128xf32>
      %44 = vector.shape_cast %43 : vector<1x1x128xf32> to vector<1x128xf32>
      %45 = vector.shape_cast %42 : vector<1x128xf32> to vector<1x1x128xf32>
      tpu.vector_store %arg7[%c0_25, %c0_26, %c0_27], %45 {strides = array<i32>} : memref<1x1x128xf32, #tpu.memory_space<vmem>>, vector<1x1x128xf32>,
    } else {
    }
    return
  }
  func.func @transform_0(%arg0: i32, %arg1: i32) -> (i32, i32) {
    %c0_i32 = arith.constant 0 : i32
    return %arg0, %arg1 : i32, i32
  }
  func.func @transform_1(%arg0: i32, %arg1: i32) -> (i32, i32) {
    %c0_i32 = arith.constant 0 : i32
    %c0_i32_0 = arith.constant 0 : i32
    return %arg1, %c0_i32 : i32, i32
  }
  func.func @transform_2(%arg0: i32, %arg1: i32) -> (i32, i32) {
    %c0_i32 = arith.constant 0 : i32
    %c0_i32_0 = arith.constant 0 : i32
    %c0_i32_1 = arith.constant 0 : i32
    return %c0_i32, %c0_i32_0 : i32, i32
  }
  func.func @transform_3(%arg0: i32, %arg1: i32) -> (i32, i32) {
    %c0_i32 = arith.constant 0 : i32
    %c0_i32_0 = arith.constant 0 : i32
    %c0_i32_1 = arith.constant 0 : i32
    return %c0_i32, %c0_i32_0 : i32, i32
  }
  func.func @transform_4(%arg0: i32, %arg1: i32) -> i32 {
    %c0_i32 = arith.constant 0 : i32
    %c0_i32_0 = arith.constant 0 : i32
    return %c0_i32 : i32
  }
  func.func @transform_5(%arg0: i32, %arg1: i32) -> (i32, i32, i32) {
    %c0_i32 = arith.constant 0 : i32
    %c0_i32_0 = arith.constant 0 : i32
    %c0_i32_1 = arith.constant 0 : i32
    return %arg0, %c0_i32, %c0_i32_0 : i32, i32, i32
  }
}

</mosaic_0001>

<bundles_post_ra>
// kernel: tpu_custom_call.1
= control target key start
LH: loop header
LB: loop body
LE: loop exit
PB: predicated region body
PF: predicated region fallthrough
CT: control target
= control target key end

     0   :  { %s1461_s0 = inlined_call_operand.vmem [shape: bf16[128,32], index: 0, kind: input, shape index: {}]   ;;  %s1462_s1 = inlined_call_operand.vmem [shape: bf16[32,32], index: 1, kind: input, shape index: {}]   ;;  %s1463_s2 = inlined_call_operand.vmem [shape: f32[1,32], index: 2, kind: input, shape index: {}]   ;;  %s1464_s3 = inlined_call_operand.vmem [shape: f32[1,32], index: 3, kind: input, shape index: {}]   ;;  %s1465_s4 = inlined_call_operand.<no memory space> [shape: f32[1], index: 4, kind: input, shape index: {}]   ;;  %s1466_s5 = inlined_call_operand.hbm [shape: f32[1,1,128], index: 5, kind: output, shape index: {}]  }
   0x1   :  { %v858_v0 = vld [vmem:[%s1462_s1 + $0x8] sm:$0xff]  ;;  %v857_v1 = vld [vmem:[%s1462_s1] sm:$0xff] }
   0x2   :  { %859 = vmatpush.bf16.msra.mxu2 %v858_v0  ;;  %860 = vmatpush.bf16.msra.mxu3 %v858_v0 }
   0x3   :  { %163 = vmatpush.bf16.msra.mxu0 %v858_v0 }
   0x4   :  { %11 = vsyncpa [#allocation5], 0  ;;  %v852_v2 = vld [vmem:[%s1461_s0 + $0x18] sm:$0xff]  ;;  %v855_v3 = vld [vmem:[%s1461_s0 + $0x30] sm:$0xff]  ;;  %vm27_vm0 = vcmask 261120   ;;  %v924_v5 = vmov 0.0  }
   0x5   :  { %v849_v4 = vld [vmem:[%s1461_s0] sm:$0xff]  ;;  %34 = vst.msk [vmem:[#allocation2 + $0x30] sm:$0xff] %vm27_vm0, %v924_v5  ;;  %v856_v7 = vld [vmem:[%s1461_s0 + $0x38] sm:$0xff]  ;;  %v850_v8 = vld [vmem:[%s1461_s0 + $0x8] sm:$0xff]  ;;  %s925_s16 = smov [#allocation4]   ;;  %s775_s20 = sshll.u32 %s1466_s5, 4  ;;  %s776_s20 = int_to_ptr.hbm [resolvable:$true] %s775_s20 }
   0x6   :  { %861 = vmatpush.bf16.msra.mxu2 %v857_v1  ;;  %862 = vmatpush.bf16.msra.mxu3 %v857_v1  ;;  %28 = vst.msk [vmem:[#allocation2] sm:$0xff] %vm27_vm0, %v924_v5  ;;  %v853_v6 = vld [vmem:[%s1461_s0 + $0x20] sm:$0xff]  ;;  %v854_v9 = vld [vmem:[%s1461_s0 + $0x28] sm:$0xff]  ;;  %v851_v10 = vld [vmem:[%s1461_s0 + $0x10] sm:$0xff]  ;;  %s773_s17 = sshll.u32 %s925_s16, 4  ;;  %s774_s17 = int_to_ptr.vmem [resolvable:$true] %s773_s17 }
   0x7   :  { %164 = vmatpush.bf16.msra.mxu0 %v857_v1  ;;  %29 = vst.msk [vmem:[#allocation2 + $0x8] sm:$0xff] %vm27_vm0, %v924_v5  ;;  %v1017_v27 = vld [vmem:[%s1463_s2] ss:$0 sm:$0xff] }
   0x8   :  { %30 = vst.msk [vmem:[#allocation2 + $0x10] sm:$0xff] %vm27_vm0, %v924_v5 }
   0x9   :  { %827 = vmatmul.msk.bf16.vlgmr.msra.gmra.mxu2 %vm27_vm0, %v852_v2  ;;  %830 = vmatmul.msk.bf16.vlgmr.msra.gmra.mxu3 %vm27_vm0, %v855_v3  ;;  %31 = vst.msk [vmem:[#allocation2 + $0x18] sm:$0xff] %vm27_vm0, %v924_v5 }
   0xa   :  { %824 = vmatmul.msk.bf16.vlgmr.msra.gmra.mxu0 %vm27_vm0, %v849_v4  ;;  %32 = vst.msk [vmem:[#allocation2 + $0x20] sm:$0xff] %vm27_vm0, %v924_v5 }
   0xb   :  { %33 = vst.msk [vmem:[#allocation2 + $0x28] sm:$0xff] %vm27_vm0, %v924_v5 }
   0xc   :  { %35 = vst.msk [vmem:[#allocation2 + $0x38] sm:$0xff] %vm27_vm0, %v924_v5  ;;  %v50_v14 = vld [vmem:[#allocation2 + $0x30] sm:$0xff] }
   0xd   :  { %36 = vst.msk [vmem:[#allocation2 + $0x40] sm:$0xff] %vm27_vm0, %v924_v5  ;;  %v44_v11 = vld [vmem:[#allocation2] sm:$0xff] }
   0xe   :  { %37 = vst.msk [vmem:[#allocation2 + $0x48] sm:$0xff] %vm27_vm0, %v924_v5  ;;  %v45_v20 = vld [vmem:[#allocation2 + $0x8] sm:$0xff] }
   0xf   :  { %38 = vst.msk [vmem:[#allocation2 + $0x50] sm:$0xff] %vm27_vm0, %v924_v5  ;;  %v46_v30 = vld [vmem:[#allocation2 + $0x10] sm:$0xff] }
  0x10   :  { %39 = vst.msk [vmem:[#allocation2 + $0x58] sm:$0xff] %vm27_vm0, %v924_v5  ;;  %v47_v44 = vld [vmem:[#allocation2 + $0x18] sm:$0xff] }
  0x11   :  { %40 = vst.msk [vmem:[#allocation2 + $0x60] sm:$0xff] %vm27_vm0, %v924_v5  ;;  %v48_v58 = vld [vmem:[#allocation2 + $0x20] sm:$0xff] }
  0x12   :  { %41 = vst.msk [vmem:[#allocation2 + $0x68] sm:$0xff] %vm27_vm0, %v924_v5 }
  0x13   :  { %42 = vst.msk [vmem:[#allocation2 + $0x70] sm:$0xff] %vm27_vm0, %v924_v5  ;;  %v51_v23 = vld [vmem:[#allocation2 + $0x38] sm:$0xff] }
  0x14   :  { %43 = vst.msk [vmem:[#allocation2 + $0x78] sm:$0xff] %vm27_vm0, %v924_v5  ;;  %v52_v35 = vld [vmem:[#allocation2 + $0x40] sm:$0xff] }
  0x15   :  { %v53_v50 = vld [vmem:[#allocation2 + $0x48] sm:$0xff] }
  0x16   :  { %v54_v0 = vld [vmem:[#allocation2 + $0x50] sm:$0xff] }
  0x18   :  { %v56_v15 = vld [vmem:[#allocation2 + $0x60] sm:$0xff] }
  0x19   :  { %828 = vmatmul.msk.bf16.gmra.mxu2 %vm27_vm0, %v853_v6  ;;  %831 = vmatmul.msk.bf16.gmra.mxu3 %vm27_vm0, %v856_v7  ;;  %v57_v24 = vld [vmem:[#allocation2 + $0x68] sm:$0xff] }
  0x1a   :  { %825 = vmatmul.msk.bf16.gmra.mxu0 %vm27_vm0, %v850_v8  ;;  %v58_v36 = vld [vmem:[#allocation2 + $0x70] sm:$0xff]  ;;  %v49_v6 = vld [vmem:[#allocation2 + $0x28] sm:$0xff] }
  0x1b   :  { %v59_v51 = vld [vmem:[#allocation2 + $0x78] sm:$0xff] }
  0x29   :  { %829 = vmatmul.msk.bf16.gmra.mxu2 %vm27_vm0, %v854_v9 }
  0x2a   :  { %826 = vmatmul.msk.bf16.gmra.mxu0 %vm27_vm0, %v851_v10 }
  0x87   :  { %v166_v12 = vpop.f32.mrf.mxu0 }
  0x88   :  { %v206_v13 = vadd.f32 %v166_v12, %v44_v11 }
  0x8a   :  { %222 = vst.msk [vmem:[#allocation2] sm:$0xff] %vm27_vm0, %v206_v13 }
  0x8c   :  { %v181_v16 = vpop.f32.mrf.mxu2  ;;  %v196_v17 = vpop.f32.mrf.mxu3 }
  0x8d   :  { %v212_v18 = vadd.f32 %v181_v16, %v50_v14  ;;  %v218_v19 = vadd.f32 %v196_v17, %v56_v15  ;;  %v55_v14 = vld [vmem:[#allocation2 + $0x58] sm:$0xff] }
  0x8f   :  { %228 = vst.msk [vmem:[#allocation2 + $0x30] sm:$0xff] %vm27_vm0, %v212_v18  ;;  %v168_v21 = vpop.f32.mrf.mxu0 }
  0x90   :  { %234 = vst.msk [vmem:[#allocation2 + $0x60] sm:$0xff] %vm27_vm0, %v218_v19  ;;  %v207_v22 = vadd.f32 %v168_v21, %v45_v20 }
  0x92   :  { %223 = vst.msk [vmem:[#allocation2 + $0x8] sm:$0xff] %vm27_vm0, %v207_v22 }
  0x94   :  { %v183_v25 = vpop.f32.mrf.mxu2  ;;  %v198_v26 = vpop.f32.mrf.mxu3 }
  0x95   :  { %v213_v28 = vadd.f32 %v183_v25, %v51_v23  ;;  %v219_v29 = vadd.f32 %v198_v26, %v57_v24 }
  0x97   :  { %229 = vst.msk [vmem:[#allocation2 + $0x38] sm:$0xff] %vm27_vm0, %v213_v28  ;;  %v253_v31 = vld [vmem:[#allocation2 + $0x60] sm:$0xff]  ;;  %v171_v32 = vpop.f32.mrf.mxu0 }
  0x98   :  { %235 = vst.msk [vmem:[#allocation2 + $0x68] sm:$0xff] %vm27_vm0, %v219_v29  ;;  %v273_v33 = vadd.f32 %v1017_v27, %v253_v31  ;;  %v208_v34 = vadd.f32 %v171_v32, %v46_v30 }
  0x9a   :  { %v1022_v37 = vmax.f32 %v273_v33, 0.0  ;;  %224 = vst.msk [vmem:[#allocation2 + $0x10] sm:$0xff] %vm27_vm0, %v208_v34 }
  0x9c   :  { %v186_v38 = vpop.f32.mrf.mxu2  ;;  %v201_v39 = vpop.f32.mrf.mxu3  ;;  %v329_v40 = vsel %vm27_vm0, %v1022_v37, 0.0  ;;  %v353_v41 = vmul.f32 %v1022_v37, %v1022_v37 }
  0x9d   :  { %v214_v42 = vadd.f32 %v186_v38, %v52_v35  ;;  %v220_v43 = vadd.f32 %v201_v39, %v58_v36  ;;  %330 = vadd.xlane.f32.xlu0 %v329_v40 }
  0x9e   :  { %v393_v45 = vsel %vm27_vm0, %v353_v41, 0.0  ;;  %v248_v34 = vld [vmem:[#allocation2 + $0x38] sm:$0xff] }
  0x9f   :  { %230 = vst.msk [vmem:[#allocation2 + $0x40] sm:$0xff] %vm27_vm0, %v214_v42  ;;  %394 = vadd.xlane.f32.xlu1 %v393_v45  ;;  %v254_v46 = vld [vmem:[#allocation2 + $0x68] sm:$0xff]  ;;  %v173_v47 = vpop.f32.mrf.mxu0  ;;  %v268_v39 = vadd.f32 %v1017_v27, %v248_v34  ;;  %v247_v42 = vld [vmem:[#allocation2 + $0x30] sm:$0xff] }
  0xa0   :  { %236 = vst.msk [vmem:[#allocation2 + $0x70] sm:$0xff] %vm27_vm0, %v220_v43  ;;  %v274_v48 = vadd.f32 %v1017_v27, %v254_v46  ;;  %v209_v49 = vadd.f32 %v173_v47, %v47_v44  ;;  %v267_v45 = vadd.f32 %v1017_v27, %v247_v42 }
  0xa1   :  { %v1088_v44 = vmax.f32 %v268_v39, 0.0 }
  0xa2   :  { %v1033_v52 = vmax.f32 %v274_v48, 0.0  ;;  %225 = vst.msk [vmem:[#allocation2 + $0x18] sm:$0xff] %vm27_vm0, %v209_v49  ;;  %v1096_v49 = vmax.f32 %v267_v45, 0.0 }
  0xa3   :  { %v314_v48 = vsel %vm27_vm0, %v1088_v44, 0.0 }
  0xa4   :  { %v188_v53 = vpop.f32.mrf.mxu2  ;;  %v203_v54 = vpop.f32.mrf.mxu3  ;;  %v332_v55 = vsel %vm27_vm0, %v1033_v52, 0.0  ;;  %v354_v61 = vmul.f32 %v1033_v52, %v1033_v52 }
  0xa5   :  { %v215_v56 = vadd.f32 %v188_v53, %v53_v50  ;;  %v221_v57 = vadd.f32 %v203_v54, %v59_v51  ;;  %333 = vadd.xlane.f32.xlu2 %v332_v55  ;;  %v347_v53 = vmul.f32 %v1096_v49, %v1096_v49  ;;  %v348_v54 = vmul.f32 %v1088_v44, %v1088_v44 }
  0xa6   :  { %v396_v3 = vsel %vm27_vm0, %v354_v61, 0.0  ;;  %v249_v35 = vld [vmem:[#allocation2 + $0x40] sm:$0xff] }
  0xa7   :  { %231 = vst.msk [vmem:[#allocation2 + $0x48] sm:$0xff] %vm27_vm0, %v215_v56  ;;  %v255_v59 = vld [vmem:[#allocation2 + $0x70] sm:$0xff]  ;;  %v176_v60 = vpop.f32.mrf.mxu0  ;;  %v269_v41 = vadd.f32 %v1017_v27, %v249_v35 }
  0xa8   :  { %237 = vst.msk [vmem:[#allocation2 + $0x78] sm:$0xff] %vm27_vm0, %v221_v57  ;;  %v275_v62 = vadd.f32 %v1017_v27, %v255_v59  ;;  %v210_v63 = vadd.f32 %v176_v60, %v48_v58  ;;  %v375_v58 = vsel %vm27_vm0, %v347_v53, 0.0  ;;  %v378_v60 = vsel %vm27_vm0, %v348_v54, 0.0 }
  0xa9   :  { %v1091_v46 = vmax.f32 %v269_v41, 0.0 }
  0xaa   :  { %v1043_v1 = vmax.f32 %v275_v62, 0.0  ;;  %226 = vst.msk [vmem:[#allocation2 + $0x20] sm:$0xff] %vm27_vm0, %v210_v63  ;;  %v244_v62 = vld [vmem:[#allocation2 + $0x18] sm:$0xff] }
  0xab   :  { %v317_v50 = vsel %vm27_vm0, %v1091_v46, 0.0  ;;  %v349_v51 = vmul.f32 %v1091_v46, %v1091_v46 }
  0xac   :  { %v191_v2 = vpop.f32.mrf.mxu2  ;;  %v335_v4 = vsel %vm27_vm0, %v1043_v1, 0.0  ;;  %v355_v10 = vmul.f32 %v1043_v1, %v1043_v1 }
  0xad   :  { %v216_v5 = vadd.f32 %v191_v2, %v54_v0  ;;  %397 = vadd.xlane.f32.xlu2 %v396_v3  ;;  %336 = vadd.xlane.f32.xlu1 %v335_v4  ;;  %v381_v57 = vsel %vm27_vm0, %v349_v51, 0.0  ;;  %v264_v0 = vadd.f32 %v1017_v27, %v244_v62  ;;  %v311_v3 = vsel %vm27_vm0, %v1096_v49, 0.0 }
  0xae   :  { %v250_v7 = vld [vmem:[#allocation2 + $0x48] sm:$0xff]  ;;  %v399_v17 = vsel %vm27_vm0, %v355_v10, 0.0 }
  0xaf   :  { %232 = vst.msk [vmem:[#allocation2 + $0x50] sm:$0xff] %vm27_vm0, %v216_v5  ;;  %v256_v8 = vld [vmem:[#allocation2 + $0x78] sm:$0xff]  ;;  %v178_v9 = vpop.f32.mrf.mxu0  ;;  %v270_v12 = vadd.f32 %v1017_v27, %v250_v7  ;;  %v1120_v5 = vmax.f32 %v264_v0, 0.0  ;;  %v242_v10 = vld [vmem:[#allocation2 + $0x8] sm:$0xff] }
  0xb0   :  { %v276_v11 = vadd.f32 %v1017_v27, %v256_v8  ;;  %v211_v13 = vadd.f32 %v178_v9, %v49_v6 }
  0xb1   :  { %v1060_v19 = vmax.f32 %v270_v12, 0.0  ;;  %v245_v55 = vld [vmem:[#allocation2 + $0x20] sm:$0xff]  ;;  %v344_v8 = vmul.f32 %v1120_v5, %v1120_v5 }
  0xb2   :  { %v1054_v15 = vmax.f32 %v276_v11, 0.0  ;;  %227 = vst.msk [vmem:[#allocation2 + $0x28] sm:$0xff] %vm27_vm0, %v211_v13  ;;  %v265_v59 = vadd.f32 %v1017_v27, %v245_v55  ;;  %v243_v11 = vld [vmem:[#allocation2 + $0x10] sm:$0xff] }
  0xb3   :  { %v350_v24 = vmul.f32 %v1060_v19, %v1060_v19  ;;  %v320_v38 = vsel %vm27_vm0, %v1060_v19, 0.0  ;;  %v366_v13 = vsel %vm27_vm0, %v344_v8, 0.0 }
  0xb4   :  { %v193_v16 = vpop.f32.mrf.mxu2  ;;  %v338_v18 = vsel %vm27_vm0, %v1054_v15, 0.0  ;;  %v356_v23 = vmul.f32 %v1054_v15, %v1054_v15  ;;  %v1111_v63 = vmax.f32 %v265_v59, 0.0 }
  0xb5   :  { %v217_v20 = vadd.f32 %v193_v16, %v55_v14  ;;  %400 = vadd.xlane.f32.xlu1 %v399_v17  ;;  %339 = vadd.xlane.f32.xlu0 %v338_v18  ;;  %v384_v29 = vsel %vm27_vm0, %v350_v24, 0.0  ;;  %v262_v14 = vadd.f32 %v1017_v27, %v242_v10  ;;  %v263_v17 = vadd.f32 %v1017_v27, %v243_v11  ;;  %v241_v18 = vld [vmem:[#allocation2] sm:$0xff] }
  0xb6   :  { %v251_v21 = vld [vmem:[#allocation2 + $0x50] sm:$0xff]  ;;  %v402_v28 = vsel %vm27_vm0, %v356_v23, 0.0  ;;  %v305_v4 = vsel %vm27_vm0, %v1111_v63, 0.0  ;;  %v345_v9 = vmul.f32 %v1111_v63, %v1111_v63  ;;  %v302_v23 = vsel %vm27_vm0, %v1120_v5, 0.0 }
  0xb7   :  { %233 = vst.msk [vmem:[#allocation2 + $0x58] sm:$0xff] %vm27_vm0, %v217_v20  ;;  %v271_v22 = vadd.f32 %v1017_v27, %v251_v21  ;;  %v1135_v20 = vmax.f32 %v262_v14, 0.0  ;;  %v261_v21 = vadd.f32 %v1017_v27, %v241_v18 }
  0xb8   :  { %v369_v16 = vsel %vm27_vm0, %v345_v9, 0.0 }
  0xb9   :  { %v1068_v25 = vmax.f32 %v271_v22, 0.0  ;;  %v246_v56 = vld [vmem:[#allocation2 + $0x28] sm:$0xff]  ;;  %v1138_v22 = vmax.f32 %v263_v17, 0.0  ;;  %v296_v24 = vsel %vm27_vm0, %v1135_v20, 0.0 }
  0xba   :  { %v266_v61 = vadd.f32 %v1017_v27, %v246_v56 }
  0xbb   :  { %v351_v26 = vmul.f32 %v1068_v25, %v1068_v25  ;;  %v323_v36 = vsel %vm27_vm0, %v1068_v25, 0.0 }
  0xbc   :  { %v1114_v2 = vmax.f32 %v266_v61, 0.0 }
  0xbd   :  { %403 = vadd.xlane.f32.xlu0 %v402_v28  ;;  %385 = vadd.xlane.f32.xlu1 %v384_v29  ;;  %v387_v30 = vsel %vm27_vm0, %v351_v26, 0.0  ;;  %v1144_v26 = vmax.f32 %v261_v21, 0.0  ;;  %v299_v28 = vsel %vm27_vm0, %v1138_v22, 0.0  ;;  %v343_v29 = vmul.f32 %v1138_v22, %v1138_v22 }
  0xbe   :  { %388 = vadd.xlane.f32.xlu2 %v387_v30  ;;  %v252_v31 = vld [vmem:[#allocation2 + $0x58] sm:$0xff]  ;;  %v308_v6 = vsel %vm27_vm0, %v1114_v2, 0.0  ;;  %v346_v7 = vmul.f32 %v1114_v2, %v1114_v2  ;;  %v342_v30 = vmul.f32 %v1135_v20, %v1135_v20 }
  0xbf   :  { %v272_v32 = vadd.f32 %v1017_v27, %v252_v31  ;;  %v341_v27 = vmul.f32 %v1144_v26, %v1144_v26  ;;  %v363_v31 = vsel %vm27_vm0, %v343_v29, 0.0  ;;  %v293_v35 = vsel %vm27_vm0, %v1144_v26, 0.0 }
  0xc0   :  { %v372_v12 = vsel %vm27_vm0, %v346_v7, 0.0  ;;  %v360_v34 = vsel %vm27_vm0, %v342_v30, 0.0 }
  0xc1   :  { %v1076_v33 = vmax.f32 %v272_v32, 0.0  ;;  %v357_v32 = vsel %vm27_vm0, %v341_v27, 0.0 }
  0xc3   :  { %v326_v40 = vsel %vm27_vm0, %v1076_v33, 0.0  ;;  %v352_v43 = vmul.f32 %v1076_v33, %v1076_v33 }
  0xc5   :  { %324 = vadd.xlane.f32.xlu1 %v323_v36  ;;  %321 = vadd.xlane.f32.xlu0 %v320_v38  ;;  %v390_v47 = vsel %vm27_vm0, %v352_v43, 0.0 }
  0xc6   :  { %327 = vadd.xlane.f32.xlu2 %v326_v40 }
  0xcd   :  { %391 = vadd.xlane.f32.xlu0 %v390_v47  ;;  %315 = vadd.xlane.f32.xlu1 %v314_v48 }
  0xce   :  { %318 = vadd.xlane.f32.xlu2 %v317_v50 }
  0xd5   :  { %382 = vadd.xlane.f32.xlu0 %v381_v57  ;;  %376 = vadd.xlane.f32.xlu1 %v375_v58 }
  0xd6   :  { %379 = vadd.xlane.f32.xlu2 %v378_v60 }
  0xdd   :  { %312 = vadd.xlane.f32.xlu0 %v311_v3  ;;  %306 = vadd.xlane.f32.xlu1 %v305_v4 }
  0xde   :  { %309 = vadd.xlane.f32.xlu2 %v308_v6 }
  0xe5   :  { %373 = vadd.xlane.f32.xlu0 %v372_v12  ;;  %367 = vadd.xlane.f32.xlu1 %v366_v13 }
  0xe6   :  { %370 = vadd.xlane.f32.xlu2 %v369_v16 }
  0xed   :  { %303 = vadd.xlane.f32.xlu0 %v302_v23  ;;  %297 = vadd.xlane.f32.xlu1 %v296_v24 }
  0xee   :  { %300 = vadd.xlane.f32.xlu2 %v299_v28 }
  0xf5   :  { %364 = vadd.xlane.f32.xlu0 %v363_v31  ;;  %358 = vadd.xlane.f32.xlu1 %v357_v32 }
  0xf6   :  { %361 = vadd.xlane.f32.xlu2 %v360_v34 }
  0xfd   :  { %294 = vadd.xlane.f32.xlu0 %v293_v35 }
 0x110   :  { %v331_v36 = vpop.xlane.xlu0 %330 }
 0x111   :  { %v1159_v40 = vmul.f32 0.03125, %v331_v36 }
 0x112   :  { %v395_v38 = vpop.xlane.xlu1 %394 }
 0x113   :  { %v449_v42 = vmul.f32 %v1159_v40, %v1159_v40  ;;  %v433_v43 = vmul.f32 0.03125, %v395_v38 }
 0x115   :  { %v465_v51 = vsub.f32 %v433_v43, %v449_v42 }
 0x117   :  { %v481_v55 = vmax.f32 %v465_v51, 0.0 }
 0x118   :  { %v334_v39 = vpop.xlane.xlu2 %333 }
 0x119   :  { %v1161_v41 = vmul.f32 0.03125, %v334_v39  ;;  %v1171_v61 = vadd.f32 1e-12, %v481_v55 }
 0x11b   :  { %v450_v50 = vmul.f32 %v1161_v41, %v1161_v41  ;;  %866 = vrsqrt.f32 %v1171_v61  ;;  %vm643_vm11 = vweird.f32 %v1171_v61 }
 0x120   :  { %v398_v45 = vpop.xlane.xlu2 %397  ;;  %v337_v47 = vpop.xlane.xlu1 %336 }
 0x121   :  { %v434_v48 = vmul.f32 0.03125, %v398_v45  ;;  %v1167_v54 = vmul.f32 0.03125, %v337_v47  ;;  %v1184_v13 = vpop.eup %866 }
 0x122   :  { %v638_v30 = vmul.f32 %v1184_v13, %v1171_v61  ;;  %vm644_vm10 = vweird.f32 %v1184_v13 }
 0x123   :  { %v466_v53 = vsub.f32 %v434_v48, %v450_v50  ;;  %v451_v59 = vmul.f32 %v1167_v54, %v1167_v54  ;;  %vm645_vm12 = vmor %vm643_vm11, %vm644_vm10 }
 0x124   :  { %v639_v47 = vmul.f32 %v1184_v13, %v638_v30 }
 0x125   :  { %v482_v56 = vmax.f32 %v466_v53, 0.0 }
 0x127   :  { %v1173_v0 = vadd.f32 1e-12, %v482_v56 }
 0x128   :  { %v401_v57 = vpop.xlane.xlu1 %400  ;;  %v340_v58 = vpop.xlane.xlu0 %339 }
 0x129   :  { %v435_v60 = vmul.f32 0.03125, %v401_v57  ;;  %v1175_v4 = vmul.f32 0.03125, %v340_v58  ;;  %868 = vrsqrt.f32 %v1173_v0  ;;  %vm653_vm8 = vweird.f32 %v1173_v0 }
 0x12b   :  { %v467_v62 = vsub.f32 %v435_v60, %v451_v59  ;;  %v452_v9 = vmul.f32 %v1175_v4, %v1175_v4 }
 0x12d   :  { %v483_v3 = vmax.f32 %v467_v62, 0.0 }
 0x12f   :  { %v1178_v6 = vadd.f32 1e-12, %v483_v3  ;;  %v1186_v16 = vpop.eup %868 }
 0x130   :  { %v404_v7 = vpop.xlane.xlu0 %403  ;;  %v386_v8 = vpop.xlane.xlu1 %385  ;;  %v648_v31 = vmul.f32 %v1186_v16, %v1173_v0  ;;  %vm654_vm7 = vweird.f32 %v1186_v16 }
 0x131   :  { %870 = vrsqrt.f32 %v1178_v6  ;;  %v436_v10 = vmul.f32 0.03125, %v404_v7  ;;  %v389_v11 = vpop.xlane.xlu2 %388  ;;  %v430_v32 = vmul.f32 0.03125, %v386_v8  ;;  %v640_v8 = vmul.f32 0.5, %v639_v47  ;;  %vm1258_vm9 = vmor %vm653_vm8, %vm654_vm7 }
 0x132   :  { %v431_v34 = vmul.f32 0.03125, %v389_v11  ;;  %v649_v48 = vmul.f32 %v1186_v16, %v648_v31  ;;  %v500_v31 = vsub.f32 %v1054_v15, %v1175_v4  ;;  %vm663_vm4 = vweird.f32 %v1178_v6 }
 0x133   :  { %v468_v12 = vsub.f32 %v436_v10, %v452_v9 }
 0x134   :  { %v650_v9 = vmul.f32 0.5, %v649_v48 }
 0x135   :  { %v484_v14 = vmax.f32 %v468_v12, 0.0 }
 0x136   :  { %v651_v30 = vsub.f32 1.5, %v650_v9 }
 0x137   :  { %v1188_v17 = vpop.eup %870  ;;  %v516_v18 = vadd.f32 1e-12, %v484_v14 }
 0x138   :  { %v658_v21 = vmul.f32 %v1188_v17, %v1178_v6  ;;  %v325_v23 = vpop.xlane.xlu1 %324  ;;  %v322_v24 = vpop.xlane.xlu0 %321  ;;  %vm664_vm3 = vweird.f32 %v1188_v17 }
 0x139   :  { %872 = vrsqrt.f32 %v516_v18  ;;  %v1192_v28 = vmul.f32 0.03125, %v325_v23  ;;  %v1194_v29 = vmul.f32 0.03125, %v322_v24  ;;  %v328_v27 = vpop.xlane.xlu2 %327  ;;  %vm673_vm2 = vweird.f32 %v516_v18  ;;  %vm1242_vm6 = vmor %vm663_vm4, %vm664_vm3 }
 0x13a   :  { %v659_v38 = vmul.f32 %v1188_v17, %v658_v21  ;;  %v1205_v43 = vmul.f32 0.03125, %v328_v27  ;;  %v641_v27 = vsub.f32 1.5, %v640_v8 }
 0x13b   :  { %v447_v35 = vmul.f32 %v1192_v28, %v1192_v28  ;;  %v446_v36 = vmul.f32 %v1194_v29, %v1194_v29 }
 0x13c   :  { %v660_v53 = vmul.f32 0.5, %v659_v38  ;;  %v448_v60 = vmul.f32 %v1205_v43, %v1205_v43  ;;  %v496_v61 = vsub.f32 %v1076_v33, %v1205_v43 }
 0x13d   :  { %v463_v39 = vsub.f32 %v431_v34, %v447_v35  ;;  %v462_v42 = vsub.f32 %v430_v32, %v446_v36 }
 0x13e   :  { %v661_v11 = vsub.f32 1.5, %v660_v53 }
 0x13f   :  { %v873_v45 = vpop.eup %872  ;;  %v479_v50 = vmax.f32 %v463_v39, 0.0  ;;  %v478_v51 = vmax.f32 %v462_v42, 0.0 }
 0x140   :  { %v668_v55 = vmul.f32 %v873_v45, %v516_v18  ;;  %v392_v56 = vpop.xlane.xlu0 %391  ;;  %v316_v57 = vpop.xlane.xlu1 %315  ;;  %vm674_vm1 = vweird.f32 %v873_v45  ;;  %v662_v38 = vmul.f32 %v1188_v17, %v661_v11 }
 0x141   :  { %v1209_v58 = vadd.f32 1e-12, %v479_v50  ;;  %v1211_v59 = vadd.f32 1e-12, %v478_v51  ;;  %v432_v62 = vmul.f32 0.03125, %v392_v56  ;;  %v319_v3 = vpop.xlane.xlu2 %318  ;;  %v1219_v23 = vmul.f32 0.03125, %v316_v57  ;;  %vm675_vm5 = vmor %vm673_vm2, %vm674_vm1 }
 0x142   :  { %v669_v7 = vmul.f32 %v873_v45, %v668_v55  ;;  %v1217_v21 = vmul.f32 0.03125, %v319_v3  ;;  %v652_v56 = vmul.f32 %v1186_v16, %v651_v30  ;;  %v499_v3 = vsub.f32 %v1043_v1, %v1167_v54 }
 0x143   :  { %874 = vrsqrt.f32 %v1209_v58  ;;  %v464_v10 = vsub.f32 %v432_v62, %v448_v60  ;;  %v444_v48 = vmul.f32 %v1219_v23, %v1219_v23  ;;  %vm623_vm14 = vweird.f32 %v1209_v58 }
 0x144   :  { %876 = vrsqrt.f32 %v1211_v59  ;;  %v670_v12 = vmul.f32 0.5, %v669_v7  ;;  %v445_v42 = vmul.f32 %v1217_v21, %v1217_v21  ;;  %v656_v1 = vsel %vm1258_vm9, %v1186_v16, %v652_v56 }
 0x145   :  { %v480_v14 = vmax.f32 %v464_v10, 0.0  ;;  %v642_v10 = vmul.f32 %v1184_v13, %v641_v27 }
 0x146   :  { %v671_v24 = vsub.f32 1.5, %v670_v12 }
 0x147   :  { %v1223_v32 = vadd.f32 1e-12, %v480_v14 }
 0x148   :  { %v383_v34 = vpop.xlane.xlu0 %382  ;;  %v377_v35 = vpop.xlane.xlu1 %376  ;;  %v672_v36 = vmul.f32 %v873_v45, %v671_v24 }
 0x149   :  { %v1227_v39 = vpop.eup %874  ;;  %878 = vrsqrt.f32 %v1223_v32  ;;  %v429_v15 = vmul.f32 0.03125, %v383_v34  ;;  %v380_v4 = vpop.xlane.xlu2 %379  ;;  %vm633_vm15 = vweird.f32 %v1223_v32 }
 0x14a   :  { %v1234_v47 = vpop.eup %876  ;;  %v618_v18 = vmul.f32 %v1227_v39, %v1209_v58  ;;  %v428_v50 = vmul.f32 0.03125, %v380_v4  ;;  %v676_v51 = vsel %vm675_vm5, %v873_v45, %v672_v36  ;;  %v666_v45 = vsel %vm1242_vm6, %v1188_v17, %v662_v38 }
 0x14b   :  { %v461_v6 = vsub.f32 %v429_v15, %v445_v42  ;;  %v692_v53 = vmul.f32 %v676_v51, %v500_v31  ;;  %v608_v60 = vmul.f32 %v1234_v47, %v1211_v59  ;;  %v691_v17 = vmul.f32 %v666_v45, %v499_v3 }
 0x14c   :  { %v619_v57 = vmul.f32 %v1227_v39, %v618_v18  ;;  %v460_v62 = vsub.f32 %v428_v50, %v444_v48  ;;  %v498_v31 = vsub.f32 %v1033_v52, %v1161_v41  ;;  %v646_v38 = vsel %vm645_vm12, %v1184_v13, %v642_v10 }
 0x14d   :  { %v477_v7 = vmax.f32 %v461_v6, 0.0  ;;  %832 = vmatpush.xpose.msk.msra.mxu1 %vm27_vm0, %v692_v53  ;;  %v609_v54 = vmul.f32 %v1234_v47, %v608_v60  ;;  %v497_v52 = vsub.f32 %v1022_v37, %v1159_v40  ;;  %v427_v41 = vmul.f32 0.03125, %v377_v35 }
 0x14e   :  { %v476_v8 = vmax.f32 %v460_v62, 0.0  ;;  %v620_v30 = vmul.f32 0.5, %v619_v57  ;;  %v690_v15 = vmul.f32 %v656_v1, %v498_v31  ;;  %vm624_vm1 = vweird.f32 %v1227_v39 }
 0x14f   :  { %v1264_v11 = vpop.eup %878  ;;  %v1267_v0 = vadd.f32 1e-12, %v477_v7  ;;  %v610_v48 = vmul.f32 0.5, %v609_v54  ;;  %v689_v13 = vmul.f32 %v646_v38, %v497_v52  ;;  %vm614_vm2 = vweird.f32 %v1234_v47  ;;  %vm625_vm4 = vmor %vm623_vm14, %vm624_vm1 }
 0x150   :  { %v628_v12 = vmul.f32 %v1264_v11, %v1223_v32  ;;  %v1275_v14 = vadd.f32 1e-12, %v476_v8  ;;  %v313_v24 = vpop.xlane.xlu0 %312  ;;  %v307_v27 = vpop.xlane.xlu1 %306  ;;  %v621_v18 = vsub.f32 1.5, %v620_v30  ;;  %vm634_vm13 = vweird.f32 %v1264_v11 }
 0x151   :  { %880 = vrsqrt.f32 %v1267_v0  ;;  %v1280_v34 = vmul.f32 0.03125, %v313_v24  ;;  %833 = vmatpush.xpose.msk.msra.mxu1 %vm27_vm0, %v691_v17  ;;  %v310_v16 = vpop.xlane.xlu2 %309  ;;  %v1299_v53 = vmul.f32 0.03125, %v307_v27  ;;  %v611_v57 = vsub.f32 1.5, %v610_v48  ;;  %vm635_vm3 = vmor %vm633_vm15, %vm634_vm13 }
 0x152   :  { %v629_v36 = vmul.f32 %v1264_v11, %v628_v12  ;;  %882 = vrsqrt.f32 %v1275_v14  ;;  %v1296_v51 = vmul.f32 0.03125, %v310_v16  ;;  %v622_v56 = vmul.f32 %v1227_v39, %v621_v18 }
 0x153   :  { %v443_v42 = vmul.f32 %v1280_v34, %v1280_v34  ;;  %v441_v10 = vmul.f32 %v1299_v53, %v1299_v53  ;;  %v612_v31 = vmul.f32 %v1234_v47, %v611_v57  ;;  %vm613_vm5 = vweird.f32 %v1211_v59 }
 0x154   :  { %v630_v4 = vmul.f32 0.5, %v629_v36  ;;  %v442_v45 = vmul.f32 %v1296_v51, %v1296_v51  ;;  %v626_v30 = vsel %vm625_vm4, %v1227_v39, %v622_v56  ;;  %vm1345_vm6 = vmor %vm613_vm5, %vm614_vm2  ;;  %vm603_vm8 = vweird.f32 %v1267_v0 }
 0x155   :  { %v459_v50 = vsub.f32 %v427_v41, %v443_v42  ;;  %834 = vmatpush.xpose.msk.msra.mxu1 %vm27_vm0, %v690_v15  ;;  %vm593_vm11 = vweird.f32 %v1275_v14 }
 0x156   :  { %v631_v6 = vsub.f32 1.5, %v630_v4  ;;  %v494_v4 = vsub.f32 %v1060_v19, %v1194_v29 }
 0x157   :  { %v1303_v37 = vpop.eup %880  ;;  %v475_v40 = vmax.f32 %v459_v50, 0.0 }
 0x158   :  { %v1308_v33 = vpop.eup %882  ;;  %v598_v43 = vmul.f32 %v1303_v37, %v1267_v0  ;;  %v374_v35 = vpop.xlane.xlu0 %373  ;;  %v632_v55 = vmul.f32 %v1264_v11, %v631_v6  ;;  %vm604_vm7 = vweird.f32 %v1303_v37  ;;  %v493_v0 = vsub.f32 %v1091_v46, %v1217_v21 }
 0x159   :  { %v588_v60 = vmul.f32 %v1308_v33, %v1275_v14  ;;  %v1316_v62 = vadd.f32 1e-12, %v475_v40  ;;  %v426_v3 = vmul.f32 0.03125, %v374_v35  ;;  %v368_v7 = vpop.xlane.xlu1 %367  ;;  %835 = vmatpush.xpose.msk.msra.mxu1 %vm27_vm0, %v689_v13  ;;  %v371_v8 = vpop.xlane.xlu2 %370  ;;  %vm605_vm9 = vmor %vm603_vm8, %vm604_vm7  ;;  %vm594_vm10 = vweird.f32 %v1308_v33 }
 0x15a   :  { %v599_v9 = vmul.f32 %v1303_v37, %v598_v43  ;;  %v425_v17 = vmul.f32 0.03125, %v371_v8  ;;  %v636_v1 = vsel %vm635_vm3, %v1264_v11, %v632_v55  ;;  %v495_v11 = vsub.f32 %v1068_v25, %v1192_v28  ;;  %vm1386_vm12 = vmor %vm593_vm11, %vm594_vm10 }
 0x15b   :  { %v589_v54 = vmul.f32 %v1308_v33, %v588_v60  ;;  %884 = vrsqrt.f32 %v1316_v62  ;;  %v458_v12 = vsub.f32 %v426_v3, %v442_v45  ;;  %v688_v24 = vmul.f32 %v636_v1, %v496_v61 }
 0x15c   :  { %v600_v32 = vmul.f32 0.5, %v599_v9  ;;  %v457_v27 = vsub.f32 %v425_v17, %v441_v10  ;;  %v687_v58 = vmul.f32 %v626_v30, %v495_v11  ;;  %v616_v28 = vsel %vm1345_vm6, %v1234_v47, %v612_v31 }
 0x15d   :  { %v590_v16 = vmul.f32 0.5, %v589_v54  ;;  %v474_v36 = vmax.f32 %v458_v12, 0.0  ;;  %836 = vmatpush.xpose.msk.msra.mxu1 %vm27_vm0, %v688_v24  ;;  %v424_v50 = vmul.f32 0.03125, %v368_v7  ;;  %v686_v29 = vmul.f32 %v616_v28, %v494_v4 }
 0x15e   :  { %v601_v38 = vsub.f32 1.5, %v600_v32  ;;  %v473_v52 = vmax.f32 %v457_v27, 0.0  ;;  %vm583_vm13 = vweird.f32 %v1316_v62 }
 0x15f   :  { %v1341_v41 = vadd.f32 1e-12, %v474_v36  ;;  %v591_v18 = vsub.f32 1.5, %v590_v16  ;;  %v491_v36 = vsub.f32 %v1096_v49, %v1280_v34  ;;  %v490_v49 = vsub.f32 %v1114_v2, %v1296_v51 }
 0x160   :  { %v1349_v42 = vadd.f32 1e-12, %v473_v52  ;;  %v304_v25 = vpop.xlane.xlu0 %303  ;;  %v602_v15 = vmul.f32 %v1303_v37, %v601_v38 }
 0x161   :  { %v1356_v59 = vpop.eup %884  ;;  %886 = vrsqrt.f32 %v1341_v41  ;;  %v1361_v48 = vmul.f32 0.03125, %v304_v25  ;;  %837 = vmatpush.xpose.msk.msra.mxu1 %vm27_vm0, %v687_v58  ;;  %v301_v61 = vpop.xlane.xlu2 %300  ;;  %v592_v55 = vmul.f32 %v1308_v33, %v591_v18  ;;  %vm573_vm2 = vweird.f32 %v1341_v41 }
 0x162   :  { %v578_v47 = vmul.f32 %v1356_v59, %v1316_v62  ;;  %888 = vrsqrt.f32 %v1349_v42  ;;  %v298_v19 = vpop.xlane.xlu1 %297  ;;  %v606_v40 = vsel %vm605_vm9, %v1303_v37, %v602_v15  ;;  %v1377_v35 = vmul.f32 0.03125, %v301_v61 }
 0x163   :  { %v440_v13 = vmul.f32 %v1361_v48, %v1361_v48  ;;  %v1382_v56 = vmul.f32 0.03125, %v298_v19  ;;  %v492_v37 = vsub.f32 %v1088_v44, %v1219_v23  ;;  %v685_v3 = vmul.f32 %v606_v40, %v493_v0 }
 0x164   :  { %v579_v6 = vmul.f32 %v1356_v59, %v578_v47  ;;  %v596_v8 = vsel %vm1386_vm12, %v1308_v33, %v592_v55  ;;  %vm584_vm14 = vweird.f32 %v1356_v59  ;;  %v439_v10 = vmul.f32 %v1377_v35, %v1377_v35 }
 0x165   :  { %v456_v43 = vsub.f32 %v424_v50, %v440_v13  ;;  %838 = vmatpush.xpose.msk.msra.mxu1 %vm27_vm0, %v686_v29  ;;  %v438_v12 = vmul.f32 %v1382_v56, %v1382_v56  ;;  %v684_v30 = vmul.f32 %v596_v8, %v492_v37  ;;  %vm585_vm15 = vmor %vm583_vm13, %vm584_vm14  ;;  %vm563_vm5 = vweird.f32 %v1349_v42 }
 0x166   :  { %v580_v57 = vmul.f32 0.5, %v579_v6  ;;  %v489_v6 = vsub.f32 %v1111_v63, %v1299_v53  ;;  %v488_v63 = vsub.f32 %v1120_v5, %v1361_v48 }
 0x167   :  { %v887_v60 = vpop.eup %886  ;;  %v472_v45 = vmax.f32 %v456_v43, 0.0 }
 0x168   :  { %v1391_v21 = vpop.eup %888  ;;  %v568_v7 = vmul.f32 %v887_v60, %v1341_v41  ;;  %v365_v14 = vpop.xlane.xlu0 %364  ;;  %v581_v9 = vsub.f32 1.5, %v580_v57  ;;  %vm574_vm1 = vweird.f32 %v887_v60 }
 0x169   :  { %v558_v44 = vmul.f32 %v1391_v21, %v1349_v42  ;;  %v1400_v23 = vadd.f32 1e-12, %v472_v45  ;;  %v423_v17 = vmul.f32 0.03125, %v365_v14  ;;  %839 = vmatpush.xpose.msk.msra.mxu1 %vm27_vm0, %v685_v3  ;;  %v362_v1 = vpop.xlane.xlu2 %361  ;;  %vm564_vm3 = vweird.f32 %v1391_v21  ;;  %vm575_vm4 = vmor %vm573_vm2, %vm574_vm1 }
 0x16a   :  { %v569_v54 = vmul.f32 %v887_v60, %v568_v7  ;;  %v422_v33 = vmul.f32 0.03125, %v362_v1  ;;  %v582_v24 = vmul.f32 %v1356_v59, %v581_v9  ;;  %v359_v62 = vpop.xlane.xlu1 %358  ;;  %vm565_vm6 = vmor %vm563_vm5, %vm564_vm3 }
 0x16b   :  { %v559_v32 = vmul.f32 %v1391_v21, %v558_v44  ;;  %890 = vrsqrt.f32 %v1400_v23  ;;  %v455_v27 = vsub.f32 %v423_v17, %v439_v10  ;;  %v421_v13 = vmul.f32 0.03125, %v359_v62 }
 0x16c   :  { %v570_v31 = vmul.f32 0.5, %v569_v54  ;;  %v454_v11 = vsub.f32 %v422_v33, %v438_v12  ;;  %v586_v16 = vsel %vm585_vm15, %v1356_v59, %v582_v24  ;;  %vm553_vm8 = vweird.f32 %v1400_v23 }
 0x16d   :  { %v560_v38 = vmul.f32 0.5, %v559_v32  ;;  %v471_v52 = vmax.f32 %v455_v27, 0.0  ;;  %840 = vmatpush.xpose.msk.msra.mxu1 %vm27_vm0, %v684_v30  ;;  %v683_v15 = vmul.f32 %v586_v16, %v491_v36  ;;  %v486_v32 = vsub.f32 %v1135_v20, %v1382_v56  ;;  %v693_v20 = vld [vmem:[%s1464_s3] sm:$0x1] }
 0x16e   :  { %v571_v58 = vsub.f32 1.5, %v570_v31  ;;  %v470_v39 = vmax.f32 %v454_v11, 0.0  ;;  %v695_v56 = vstv %s1465_s4 }
 0x16f   :  { %v561_v25 = vsub.f32 1.5, %v560_v38  ;;  %v503_v28 = vadd.f32 1e-12, %v471_v52 }
 0x170   :  { %v502_v4 = vadd.f32 1e-12, %v470_v39  ;;  %v295_v18 = vpop.xlane.xlu0 %294  ;;  %v572_v61 = vmul.f32 %v887_v60, %v571_v58 }
 0x171   :  { %v891_v59 = vpop.eup %890  ;;  %892 = vrsqrt.f32 %v503_v28  ;;  %v1422_v34 = vmul.f32 0.03125, %v295_v18  ;;  %841 = vmatpush.xpose.msk.msra.mxu1 %vm27_vm0, %v683_v15  ;;  %v562_v47 = vmul.f32 %v1391_v21, %v561_v25  ;;  %vm543_vm11 = vweird.f32 %v503_v28 }
 0x172   :  { %v548_v41 = vmul.f32 %v891_v59, %v1400_v23  ;;  %894 = vrsqrt.f32 %v502_v4  ;;  %v576_v50 = vsel %vm575_vm4, %v887_v60, %v572_v61  ;;  %vm554_vm7 = vweird.f32 %v891_v59 }
 0x173   :  { %v437_v19 = vmul.f32 %v1422_v34, %v1422_v34  ;;  %v682_v2 = vmul.f32 %v576_v50, %v490_v49  ;;  %v566_v29 = vsel %vm565_vm6, %v1391_v21, %v562_v47  ;;  %vm555_vm9 = vmor %vm553_vm8, %vm554_vm7  ;;  %v487_v23 = vsub.f32 %v1138_v22, %v1377_v35 }
 0x174   :  { %v549_v51 = vmul.f32 %v891_v59, %v548_v41  ;;  %v681_v55 = vmul.f32 %v566_v29, %v489_v6  ;;  %vm533_vm14 = vweird.f32 %v502_v4  ;;  %v485_v35 = vsub.f32 %v1144_v26, %v1422_v34 }
 0x175   :  { %v453_v40 = vsub.f32 %v421_v13, %v437_v19  ;;  %842 = vmatpush.xpose.msk.msra.mxu1 %vm27_vm0, %v682_v2 }
 0x176   :  { %v550_v42 = vmul.f32 0.5, %v549_v51 }
 0x177   :  { %v893_v0 = vpop.eup %892  ;;  %v469_v43 = vmax.f32 %v453_v40, 0.0 }
 0x178   :  { %v895_v57 = vpop.eup %894  ;;  %v538_v60 = vmul.f32 %v893_v0, %v503_v28  ;;  %v551_v37 = vsub.f32 1.5, %v550_v42  ;;  %vm544_vm10 = vweird.f32 %v893_v0 }
 0x179   :  { %v528_v45 = vmul.f32 %v895_v57, %v502_v4  ;;  %v501_v3 = vadd.f32 1e-12, %v469_v43  ;;  %843 = vmatpush.xpose.msk.msra.mxu1 %vm27_vm0, %v681_v55  ;;  %vm534_vm12 = vweird.f32 %v895_v57  ;;  %vm545_vm13 = vmor %vm543_vm11, %vm544_vm10 }
 0x17a   :  { %v539_v46 = vmul.f32 %v893_v0, %v538_v60  ;;  %v552_v21 = vmul.f32 %v891_v59, %v551_v37  ;;  %vm535_vm15 = vmor %vm533_vm14, %vm534_vm12 }
 0x17b   :  { %v529_v53 = vmul.f32 %v895_v57, %v528_v45  ;;  %896 = vrsqrt.f32 %v501_v3  ;;  %vm523_vm2 = vweird.f32 %v501_v3 }
 0x17c   :  { %v540_v7 = vmul.f32 0.5, %v539_v46  ;;  %v556_v14 = vsel %vm555_vm9, %v891_v59, %v552_v21 }
 0x17d   :  { %v530_v8 = vmul.f32 0.5, %v529_v53  ;;  %v680_v9 = vmul.f32 %v556_v14, %v488_v63 }
 0x17e   :  { %v541_v44 = vsub.f32 1.5, %v540_v7 }
 0x17f   :  { %v531_v10 = vsub.f32 1.5, %v530_v8  ;;  %844 = vmatpush.xpose.msk.msra.mxu1 %vm27_vm0, %v680_v9 }
 0x180   :  { %v542_v17 = vmul.f32 %v893_v0, %v541_v44 }
 0x181   :  { %v897_v1 = vpop.eup %896  ;;  %v532_v5 = vmul.f32 %v895_v57, %v531_v10 }
 0x182   :  { %v518_v48 = vmul.f32 %v897_v1, %v501_v3  ;;  %v546_v54 = vsel %vm545_vm13, %v893_v0, %v542_v17  ;;  %vm524_vm1 = vweird.f32 %v897_v1 }
 0x183   :  { %v679_v12 = vmul.f32 %v546_v54, %v487_v23  ;;  %v536_v24 = vsel %vm535_vm15, %v895_v57, %v532_v5  ;;  %vm525_vm3 = vmor %vm523_vm2, %vm524_vm1 }
 0x184   :  { %v519_v33 = vmul.f32 %v897_v1, %v518_v48  ;;  %v678_v30 = vmul.f32 %v536_v24, %v486_v32 }
 0x185   :  { %845 = vmatpush.xpose.msk.msra.mxu1 %vm27_vm0, %v679_v12 }
 0x186   :  { %v520_v27 = vmul.f32 0.5, %v519_v33 }
 0x188   :  { %v521_v31 = vsub.f32 1.5, %v520_v27 }
 0x189   :  { %846 = vmatpush.xpose.msk.msra.mxu1 %vm27_vm0, %v678_v30 }
 0x18a   :  { %v522_v22 = vmul.f32 %v897_v1, %v521_v31 }
 0x18c   :  { %v526_v11 = vsel %vm525_vm3, %v897_v1, %v522_v22 }
 0x18d   :  { %v677_v16 = vmul.f32 %v526_v11, %v485_v35 }
 0x18f   :  { %847 = vmatpush.xpose.msk.msra.mxu1 %vm27_vm0, %v677_v16 }
 0x192   :  { %848 = vmatmul.msk.f32.vlgmr.msra.gmra.mxu1 %vm27_vm0, %v693_v20 }
 0x20f   :  { %v764_v26 = vpop.f32.mrf.mxu1 }
 0x210   :  { %v765_v36 = vadd.f32 %v764_v26, %v695_v56 }
 0x212   :  { %767 = vst [vmem:[#allocation4] sm:$0x1] %v765_v36 }
 0x213   :  { %778 = dma.vmem_to_hbm [thread:$0]  %s774_s17, 16, %s776_s20, [#allocation5]  }
 0x214   :  { %922 = dma.done.wait [#allocation5], 16  }
 0x215   :  { %923 = vsyncadd [#allocation5], 4294967280 }
 0x216   :  { %783 = vsyncpa [#allocation5], 1 }

</bundles_post_ra>
